<compile_context>
chip_gen: v7x
topology: tpu7x:2x2x1
jax: 0.10.0
libtpu: 0.0.40
codegen_flags: <defaults>
</compile_context>

<pallas_src>
import jax
import jax.numpy as jnp
from jax.experimental import pallas as pl
from jax.experimental.pallas import tpu as pltpu

_LANES = 128


def _exp_kernel(x_ref, o_ref):
    # Hot path: elementwise exp on the whole VMEM tile (EUP transcendental slot).
    o_ref[...] = jnp.exp(x_ref[...]).astype(o_ref.dtype)


def _sublane_multiple(dtype) -> int:
    # f32 -> 8 sublanes, bf16/f16 -> 16, int8/fp8 -> 32: keeps vregs fully packed.
    itemsize = jnp.dtype(dtype).itemsize
    return max(8, 32 // max(1, itemsize))


def _round_up(n: int, m: int) -> int:
    return ((n + m - 1) // m) * m


def _tpu_memory_params():
    """(target_block_bytes, vmem_limit_bytes), generation-aware with a safe fallback."""
    vmem_cap = 64 * 1024 * 1024  # conservative default = v7x per-TC physical VMEM
    try:
        info = pltpu.get_tpu_info()
        cap = getattr(info, "vmem_capacity_bytes", None)
        if cap:
            vmem_cap = int(cap)
    except Exception:
        pass
    # Scoped limit: half of physical VMEM, clamped to [32, 64] MiB.
    vmem_limit = min(64 * 1024 * 1024, max(32 * 1024 * 1024, vmem_cap // 2))
    # in + out, each double-buffered => ~4 live blocks; keep ~25% headroom.
    target_block_bytes = min(8 * 1024 * 1024, (vmem_limit // 4) * 3 // 4)
    return target_block_bytes, vmem_limit


def _rows_per_block(rows, itemsize, sub, target_block_bytes,
                    min_split_bytes=4 * 1024 * 1024):
    """Number of 128-lane rows per grid step."""
    row_bytes = _LANES * itemsize
    max_rows = max(sub, (target_block_bytes // row_bytes) // sub * sub)
    if rows <= max_rows:
        if rows * row_bytes < min_split_bytes or rows < 4 * sub:
            return rows  # small input: single block, no pointless grid steps
        # Medium input that would fit one block: still use >= 4 steps so the
        # pipeline overlaps DMA with compute and both v7x TCs get >= 2 steps.
        tr = _round_up(pl.cdiv(rows, 4), sub)
    else:
        tr = max_rows
    # Short grids: round to an even step count to balance the two v7x TCs.
    grid_n = pl.cdiv(rows, tr)
    if 1 < grid_n <= 8 and grid_n % 2 == 1:
        tr2 = _round_up(pl.cdiv(rows, grid_n + 1), sub)
        if tr2 >= sub and pl.cdiv(rows, tr2) % 2 == 0:
            tr = tr2
    return max(sub, min(tr, rows))


def exp_pallas(x, *, target_block_bytes=None, vmem_limit_bytes=None):
    """Elementwise exp(x) via a Pallas TPU kernel (matches torch.exp semantics)."""
    orig_shape = x.shape
    n = x.size

    # torch.exp / jnp.exp promote integer/bool inputs to float — mirror that by
    # promoting once in the wrapper so the kernel sees a single float dtype.
    # TODO(synk): float64 inputs are not supported on TPU vector units.
    out_dtype = jax.eval_shape(jnp.exp, jax.ShapeDtypeStruct((1,), x.dtype)).dtype
    if x.dtype != out_dtype:
        x = x.astype(out_dtype)

    if n == 0 or n < _LANES:
        return jnp.exp(x)  # degenerate sizes: a kernel launch is pure overhead

    if target_block_bytes is None or vmem_limit_bytes is None:
        tb, vl = _tpu_memory_params()
        target_block_bytes = target_block_bytes or tb
        vmem_limit_bytes = vmem_limit_bytes or vl

    itemsize = jnp.dtype(out_dtype).itemsize
    sub = _sublane_multiple(out_dtype)

    compiler_params = pltpu.CompilerParams(
        dimension_semantics=("parallel",),
        vmem_limit_bytes=int(vmem_limit_bytes),
    )
    cost = pl.CostEstimate(
        flops=0, transcendentals=int(n), bytes_accessed=2 * int(n) * itemsize)

    x_flat = x.reshape(-1)  # contiguous buffer: free layout change

    if n % _LANES == 0:
        # ---- lane-dense 2-D path: (rows, 128), unmasked stores --------------
        rows = n // _LANES
        tr = _rows_per_block(rows, itemsize, sub, target_block_bytes)
        x2 = x_flat.reshape(rows, _LANES)
        out2 = pl.pallas_call(
            _exp_kernel,
            out_shape=jax.ShapeDtypeStruct((rows, _LANES), out_dtype),
            grid_spec=pltpu.PrefetchScalarGridSpec(
                num_scalar_prefetch=0,
                grid=(pl.cdiv(rows, tr),),
                in_specs=[pl.BlockSpec((tr, _LANES), lambda i: (i, 0))],
                out_specs=pl.BlockSpec((tr, _LANES), lambda i: (i, 0)),
            ),
            compiler_params=compiler_params,
            cost_estimate=cost,
        )(x2)
        return out2.reshape(orig_shape)

    # ---- ragged path: flat 1-D array, Pallas masks the partial last block ----
    rows_total = pl.cdiv(n, _LANES)
    tr = _rows_per_block(rows_total, itemsize, sub, target_block_bytes)
    block = tr * _LANES
    if block >= n:
        block = n  # single full-array block (always a legal block shape)
    out_flat = pl.pallas_call(
        _exp_kernel,
        out_shape=jax.ShapeDtypeStruct((n,), out_dtype),
        grid_spec=pltpu.PrefetchScalarGridSpec(
            num_scalar_prefetch=0,
            grid=(pl.cdiv(n, block),),
            in_specs=[pl.BlockSpec((block,), lambda i: (i,))],
            out_specs=pl.BlockSpec((block,), lambda i: (i,)),
        ),
        compiler_params=compiler_params,
        cost_estimate=cost,
    )(x_flat)
    return out_flat.reshape(orig_shape)


if __name__ == "__main__":
    key = jax.random.PRNGKey(0)
    # Shape consistent with the module's forward (any tensor); NCHW-ish demo.
    x = jax.random.normal(key, (2, 4, 16, 16), dtype=jnp.float32)

    out = jax.block_until_ready(exp_pallas(x))
    ref = jnp.exp(x)
    assert out.shape == ref.shape and out.dtype == ref.dtype
    assert jnp.allclose(out, ref, rtol=1e-5, atol=1e-6), "mismatch vs jnp.exp"

    # Tiny forced-tiling check: multi-step grid with a partial last row-block.
    x2 = jax.random.normal(jax.random.PRNGKey(1), (3, 5, 128), dtype=jnp.float32)
    out2 = jax.block_until_ready(
        exp_pallas(x2, target_block_bytes=8 * _LANES * 4,
                   vmem_limit_bytes=32 * 1024 * 1024))
    assert jnp.allclose(out2, jnp.exp(x2), rtol=1e-5, atol=1e-6), "tiled mismatch"

    print("KERNEL_OK")
</pallas_src>

<mosaic_0001>
module attributes {stable_mosaic.version = 11 : i64} {
  func.func @_exp_kernel(%arg0: i32, %arg1: memref<16x128xf32, #tpu.memory_space<vmem>>, %arg2: memref<16x128xf32, #tpu.memory_space<vmem>>) attributes {dimension_semantics = [#tpu.dimension_semantics<parallel>], iteration_bounds = array<i64: 1>, scalar_prefetch = 0 : i64, scratch_operands = 0 : i64, tpu.core_type = #tpu.core_type<tc>, window_params = [{transform_indices = @transform_0, window_bounds = array<i64: 16, 128>}, {transform_indices = @transform_1, window_bounds = array<i64: 16, 128>}]} {
    %c0 = arith.constant 0 : index
    %c0_0 = arith.constant 0 : index
    %0 = vector.load %arg1[%c0, %c0_0] : memref<16x128xf32, #tpu.memory_space<vmem>>, vector<16x128xf32>
    %1 = math.exp %0 : vector<16x128xf32>
    %c0_1 = arith.constant 0 : index
    %c0_2 = arith.constant 0 : index
    %2 = vector.load %arg2[%c0_1, %c0_2] : memref<16x128xf32, #tpu.memory_space<vmem>>, vector<16x128xf32>
    tpu.vector_store %arg2[%c0_1, %c0_2], %1 {strides = array<i32>} : memref<16x128xf32, #tpu.memory_space<vmem>>, vector<16x128xf32>,
    return
  }
  func.func @transform_0(%arg0: i32) -> (i32, i32) {
    %c0_i32 = arith.constant 0 : i32
    %c0_i32_0 = arith.constant 0 : i32
    return %arg0, %c0_i32 : i32, i32
  }
  func.func @transform_1(%arg0: i32) -> (i32, i32) {
    %c0_i32 = arith.constant 0 : i32
    %c0_i32_0 = arith.constant 0 : i32
    return %arg0, %c0_i32 : i32, i32
  }
}

</mosaic_0001>

<bundles_post_ra>
// kernel: tpu_custom_call.1
= control target key start
LH: loop header
LB: loop body
LE: loop exit
PB: predicated region body
PF: predicated region fallthrough
CT: control target
= control target key end

     0   :  { %6 = vsyncpa [#allocation3], 0  ;;  %s148_s0 = inlined_call_operand.hbm [shape: f32[16,128], index: 0, kind: input, shape index: {}]   ;;  %s149_s1 = inlined_call_operand.hbm [shape: f32[16,128], index: 1, kind: output, shape index: {}]  }
   0x1   :  { %7 = vsyncpa [#allocation4], 0  ;;  %s104_s6 = smov [#allocation2]   ;;  %s56_s10 = scalar_lea.hbm %s148_s0, 256 }
   0x2   :  { %s13_s7 = sshll.u32 %s104_s6, 4  ;;  %p57_p0 = scmp.ne.s32.totalorder %s148_s0, %s56_s10  ;;  %s14_s7 = int_to_ptr.vmem [resolvable:$true] %s13_s7 }
   0x3   :  { %p60_p1 = scmp.lt.u32.totalorder %s56_s10, %s148_s0 }
   0x5   :  { %p62_p2 = pnand %p60_p1, %p57_p0 }
   0x7   :  { %65 = shalt.err (!%p62_p2)
}
   0x8   :  { %s66_s15 = scalar_lea.vmem %s14_s7, 256  ;;  %p71_p4 = scmp.lt.s32.totalorder %s14_s7, %s14_s7 }
   0x9   :  { %p67_p3 = scmp.ne.s32.totalorder %s14_s7, %s66_s15  ;;  %p72_p5 = scmp.lt.s32.totalorder %s66_s15, %s66_s15 }
   0xb   :  { %p73_p6 = por %p72_p5, %p71_p4 }
   0xd   :  { %p74_p7 = pnand %p73_p6, %p67_p3 }
   0xf   :  { %77 = shalt.err (!%p74_p7)
}
  0x10   :  { %s105_s16 = smov 128   ;;  %s106_s17 = smov 8  }
  0x11   :  { %19 = dma.hbm_to_vmem [thread:$0]  %s148_s0, 256, %s14_s7, [#allocation3], %s105_s16, %s105_s16, %s106_s17  }
  0x12   :  { %100 = dma.done.wait [#allocation3], 256  }
  0x13   :  { %101 = vsyncadd [#allocation3], 4294967040  ;;  %v23_v0 = vld [vmem:[#allocation2] sm:$0xff]  ;;  %v24_v1 = vld [vmem:[#allocation2 + $0x8] sm:$0xff]  ;;  %s107_s20 = smov [#allocation5]  }
  0x14   :  { %v25_v2 = vmul.f32 1.442695, %v23_v0  ;;  %v27_v3 = vmul.f32 1.442695, %v24_v1  ;;  %s36_s21 = sshll.u32 %s107_s20, 4  ;;  %s37_s21 = int_to_ptr.vmem [resolvable:$true] %s36_s21 }
  0x15   :  { %s78_s22 = scalar_lea.vmem %s37_s21, 256  ;;  %p83_p9 = scmp.lt.s32.totalorder %s37_s21, %s37_s21 }
  0x16   :  { %52 = vpow2.f32 %v25_v2  ;;  %p79_p8 = scmp.ne.s32.totalorder %s37_s21, %s78_s22  ;;  %p84_p10 = scmp.lt.s32.totalorder %s78_s22, %s78_s22 }
  0x17   :  { %54 = vpow2.f32 %v27_v3 }
  0x18   :  { %p85_p11 = por %p84_p10, %p83_p9 }
  0x1a   :  { %p86_p12 = pnand %p85_p11, %p79_p8 }
  0x20   :  { %v53_v4 = vpop.eup %52 }
  0x21   :  { %v55_v5 = vpop.eup %54  ;;  %29 = vst [vmem:[#allocation5] sm:$0xff] %v53_v4 }
  0x22   :  { %30 = vst [vmem:[#allocation5 + $0x8] sm:$0xff] %v55_v5 }
  0x23   :  { %89 = shalt.err (!%p86_p12)
}
  0x24   :  { %s90_s24 = scalar_lea.hbm %s149_s1, 256 }
  0x25   :  { %p91_p13 = scmp.ne.s32.totalorder %s149_s1, %s90_s24  ;;  %p94_p0 = scmp.lt.u32.totalorder %s90_s24, %s149_s1 }
  0x27   :  { %p96_p1 = pnand %p94_p0, %p91_p13 }
  0x29   :  { %99 = shalt.err (!%p96_p1)
}
  0x2a   :  { %42 = dma.vmem_to_hbm [thread:$0]  %s37_s21, 256, %s149_s1, [#allocation4], %s105_s16, %s105_s16, %s106_s17  }
  0x2b   :  { %102 = dma.done.wait [#allocation4], 256  }
  0x2c   :  { %103 = vsyncadd [#allocation4], 4294967040 }
  0x2d   :  { %46 = vsyncpa [#allocation3], 1 }
  0x2e   :  { %47 = vsyncpa [#allocation4], 1 }

</bundles_post_ra>
